<compile_context>
chip_gen: v7x
topology: tpu7x:2x2x1
jax: 0.10.0
libtpu: 0.0.40
codegen_flags: <defaults>
</compile_context>

<pallas_src>
import functools

import jax
import jax.numpy as jnp
import numpy as np
from jax.experimental import pallas as pl
from jax.experimental.pallas import tpu as pltpu


def _round_up(v: int, m: int) -> int:
    return ((v + m - 1) // m) * m


def _qconv_fused_kernel(scale_ref, x_ref, w_ref, zc_ref, b_ref, o_ref, *,
                        tap_offsets, m_out):
    """One batch element per grid step.

    scale_ref: (1,)           f32  SMEM  requant scale = in_scale * wt_scale
    x_ref:     (1, C, L)      int8 VMEM  quantized (x_q - 128), padded, flattened image
    w_ref:     (f*f, OC, C)   bf16 VMEM  per-tap weight matrices (resident)
    zc_ref:    (OC, 1)        f32  VMEM  zero-point correction (128 - in_zp) * sum_K(w_c)
    b_ref:     (OC, 1)        f32  VMEM  bias (resident)
    o_ref:     (1, OC, m_out) f32  VMEM  dense stride-1 correlation rows (lane-dense)
    """
    # Upcast the whole image once.  Two-step int8 -> f32 -> bf16 sticks to guaranteed
    # Mosaic conversions; values are integers in [-128, 127], exact in bf16.
    x_all = x_ref[0].astype(jnp.float32).astype(jnp.bfloat16)          # (C, L)
    acc = None
    for t, d in enumerate(tap_offsets):
        # Static lane-offset slice of the flat image == the im2col tap (in-register,
        # never materialized in HBM).
        x_t = x_all[:, d:d + m_out]                                     # (C, m_out)
        part = jnp.dot(w_ref[t], x_t, preferred_element_type=jnp.float32)
        acc = part if acc is None else acc + part
    # Integer zero-point correction first (exact), then requant scale and bias --
    # the same ordering as the integer reference.
    o_ref[0] = (acc + zc_ref[...]) * scale_ref[0] + b_ref[...]


def quant_conv2d(x, weight, bias, in_scale, in_zero_point, wt_scale, wt_zero_point,
                 padding=(1, 1), stride=(1, 1)):
    """x: (B, C, H, W) f32, weight: (OC, C, f, f) f32, bias: (OC,) -> (B, OC, OH, OW) f32."""
    B, C, H, W = x.shape
    OC, _, f, _ = weight.shape
    ph = int(padding[0])          # the reference forward uses padding[0] / stride[0]
    sh = int(stride[0])           # for BOTH spatial dims
    Hp, Wp = H + 2 * ph, W + 2 * ph
    OH = (H - f + 2 * ph) // sh + 1
    OW = (W - f + 2 * ph) // sh + 1
    OH_full = Hp - f + 1          # dense stride-1 rows computed by the kernel

    in_scale = jnp.asarray(in_scale, jnp.float32)
    wt_scale = jnp.asarray(wt_scale, jnp.float32)
    in_zp = jnp.asarray(in_zero_point, jnp.float32)
    wt_zp = jnp.asarray(wt_zero_point, jnp.float32)

    # --- per-tensor quantization (torch.quantize_per_tensor + int_repr) ---
    x_q = jnp.clip(jnp.round(x / in_scale) + in_zp, 0.0, 255.0)          # quint8 repr
    w_q = jnp.clip(jnp.round(weight / wt_scale) + wt_zp, -128.0, 127.0)  # qint8 repr
    w_c = w_q - wt_zp                                                    # integer-valued f32

    # Shift the activation int repr by -128 so it streams as int8; padding with -128
    # == padding the quint8 repr with 0, exactly like F.pad(X_float) in the reference.
    x_s8 = (x_q - 128.0).astype(jnp.int8)
    x_pad = jnp.pad(x_s8, ((0, 0), (0, 0), (ph, ph), (ph, ph)), constant_values=-128)

    # Flatten the padded image; pad the flat axis so every tap slice [d, d + M_out)
    # stays in bounds (the extra lanes only feed discarded wrap columns).
    M_dense = OH_full * Wp                       # dense stride-1 output positions
    M_out = _round_up(M_dense, 128)              # lane-dense output width
    d_max = (f - 1) * Wp + (f - 1)               # largest tap offset
    L = _round_up(d_max + M_out, 128)
    x_flat = x_pad.reshape(B, C, Hp * Wp)
    x_flat = jnp.pad(x_flat, ((0, 0), (0, 0), (0, L - Hp * Wp)), constant_values=-128)

    # Per-tap (OC, C) weight matrices, tap index t = kh*f + kw (integers: exact in bf16).
    w_taps = jnp.transpose(w_c, (2, 3, 0, 1)).reshape(f * f, OC, C).astype(jnp.bfloat16)
    tap_offsets = tuple(kh * Wp + kw for kh in range(f) for kw in range(f))

    scale_total = (in_scale * wt_scale).astype(jnp.float32).reshape(1)
    w_sum = jnp.sum(w_c, axis=(1, 2, 3)).reshape(OC, 1)
    zp_corr = ((128.0 - in_zp) * w_sum).astype(jnp.float32)             # integer-valued
    bias2d = jnp.asarray(bias, jnp.float32).reshape(OC, 1)

    kernel = functools.partial(_qconv_fused_kernel,
                               tap_offsets=tap_offsets, m_out=M_out)

    # VMEM estimate (double-buffered streamed image + resident operands + output buffers
    # + accumulator).  Only raise the scoped limit when needed; cap at 48 MiB so the
    # kernel always fits v7x's 64 MiB physical VMEM per TensorCore with headroom.
    vmem_est = (2 * C * L
                + 2 * (f * f * OC * C * 2 + 2 * OC * 4)
                + 3 * OC * M_out * 4
                + (1 << 16))
    compiler_kwargs = dict(dimension_semantics=("parallel",))
    if vmem_est > 24 * (1 << 20):
        compiler_kwargs["vmem_limit_bytes"] = int(min(vmem_est + (8 << 20), 48 << 20))

    out_dense = pl.pallas_call(
        kernel,
        out_shape=jax.ShapeDtypeStruct((B, OC, M_out), jnp.float32),
        grid_spec=pltpu.PrefetchScalarGridSpec(
            num_scalar_prefetch=0,
            grid=(B,),
            in_specs=[
                pl.BlockSpec(memory_space=pltpu.MemorySpace.SMEM),      # requant scale
                pl.BlockSpec((1, C, L), lambda b: (b, 0, 0)),           # int8 image (streamed)
                pl.BlockSpec((f * f, OC, C), lambda b: (0, 0, 0)),      # weights (resident)
                pl.BlockSpec((OC, 1), lambda b: (0, 0)),                # zp correction
                pl.BlockSpec((OC, 1), lambda b: (0, 0)),                # bias
            ],
            out_specs=pl.BlockSpec((1, OC, M_out), lambda b: (b, 0, 0)),
        ),
        compiler_params=pltpu.CompilerParams(**compiler_kwargs),
    )(scale_total, x_flat, w_taps, zp_corr, bias2d)

    # Dense stride-1 rows -> NCHW: drop the wrap columns, subsample for stride.
    # Cheap slice + reshape on the small output; no transpose needed.
    out = out_dense[:, :, :M_dense].reshape(B, OC, OH_full, Wp)
    out = out[:, :, ::sh, ::sh][:, :, :OH, :OW]
    return out


if __name__ == "__main__":
    # module config: QuantConv2D(in_channels=4, out_channels=8, kernel_size=3,
    #                            stride=1, padding=1)
    B, C, H, W = 2, 4, 16, 16
    OC, f = 8, 3
    padding, stride = (1, 1), (1, 1)

    key = jax.random.PRNGKey(0)
    kx, kw, kb = jax.random.split(key, 3)
    x = jax.random.uniform(kx, (B, C, H, W), dtype=jnp.float32)        # torch.rand-like
    weight = jax.random.uniform(kw, (OC, C, f, f), dtype=jnp.float32)  # nn.Parameter(torch.rand)
    bias = jax.random.uniform(kb, (OC,), dtype=jnp.float32)

    # buffers from __init__: in_scale=1.0, in_zero_point=0, wt_scale=1.0, wt_zero_point=0
    in_scale, in_zp = 1.0, 0
    wt_scale, wt_zp = 1.0, 0

    out = quant_conv2d(x, weight, bias, in_scale, in_zp, wt_scale, wt_zp,
                       padding=padding, stride=stride)
    out = jax.block_until_ready(out)

    # Plain-JAX reference of the same quantized conv: pad the quint8 int repr with 0,
    # subtract the zero point, conv, requantize -- exactly the reference forward's path.
    x_qr = jnp.clip(jnp.round(x / in_scale) + in_zp, 0.0, 255.0)
    x_qr = jnp.pad(x_qr, ((0, 0), (0, 0),
                          (padding[0], padding[0]), (padding[0], padding[0]))) - in_zp
    w_qr = jnp.clip(jnp.round(weight / wt_scale) + wt_zp, -128.0, 127.0) - wt_zp
    ref = jax.lax.conv_general_dilated(
        x_qr, w_qr, window_strides=(stride[0], stride[0]), padding="VALID",
        dimension_numbers=("NCHW", "OIHW", "NCHW"),
    ) * (in_scale * wt_scale) + bias.reshape(1, OC, 1, 1)
    np.testing.assert_allclose(np.asarray(out), np.asarray(ref), rtol=1e-5, atol=1e-3)

    assert out.shape == (B, OC, H, W)
    print("KERNEL_OK")
</pallas_src>

<mosaic_0001>
module attributes {stable_mosaic.version = 11 : i64} {
  func.func @_qconv_fused_kernel(%arg0: i32, %arg1: memref<1xf32, #tpu.memory_space<smem>>, %arg2: memref<1x4x512xi8, #tpu.memory_space<vmem>>, %arg3: memref<9x8x4xbf16, #tpu.memory_space<vmem>>, %arg4: memref<8x1xf32, #tpu.memory_space<vmem>>, %arg5: memref<8x1xf32, #tpu.memory_space<vmem>>, %arg6: memref<1x8x384xf32, #tpu.memory_space<vmem>>) attributes {dimension_semantics = [#tpu.dimension_semantics<parallel>], iteration_bounds = array<i64: 2>, scalar_prefetch = 0 : i64, scratch_operands = 0 : i64, tpu.core_type = #tpu.core_type<tc>, window_params = [{transform_indices = @transform_0, window_bounds = array<i64: 1>}, {transform_indices = @transform_1, window_bounds = array<i64: 1, 4, 512>}, {pipeline_mode = #tpu.pipeline_mode<synchronous>, transform_indices = @transform_2, window_bounds = array<i64: 9, 8, 4>}, {pipeline_mode = #tpu.pipeline_mode<synchronous>, transform_indices = @transform_3, window_bounds = array<i64: 8, 1>}, {pipeline_mode = #tpu.pipeline_mode<synchronous>, transform_indices = @transform_4, window_bounds = array<i64: 8, 1>}, {transform_indices = @transform_5, window_bounds = array<i64: 1, 8, 384>}]} {
    %c0 = arith.constant 0 : index
    %c0_0 = arith.constant 0 : index
    %c0_1 = arith.constant 0 : index
    %0 = vector.load %arg2[%c0, %c0_0, %c0_1] : memref<1x4x512xi8, #tpu.memory_space<vmem>>, vector<1x4x512xi8>
    %1 = vector.shape_cast %0 : vector<1x4x512xi8> to vector<4x512xi8>
    %2 = arith.sitofp %1 : vector<4x512xi8> to vector<4x512xf32>
    %3 = arith.truncf %2 : vector<4x512xf32> to vector<4x512xbf16>
    %4 = vector.extract_strided_slice %3 {offsets = [0, 0], sizes = [4, 384], strides = [1, 1]} : vector<4x512xbf16> to vector<4x384xbf16>
    %c0_2 = arith.constant 0 : index
    %c0_3 = arith.constant 0 : index
    %c0_4 = arith.constant 0 : index
    %5 = vector.load %arg3[%c0_2, %c0_3, %c0_4] : memref<9x8x4xbf16, #tpu.memory_space<vmem>>, vector<1x8x4xbf16>
    %6 = vector.shape_cast %5 : vector<1x8x4xbf16> to vector<8x4xbf16>
    %cst = arith.constant dense<0.000000e+00> : vector<8x384xf32>
    %7 = tpu.matmul %6, %4, %cst {dimension_numbers = #tpu.dot_dimension_numbers<[1], [0], [0], [1], [0, 0, 1, 1], [], []>} : vector<8x4xbf16>, vector<4x384xbf16>, vector<8x384xf32> -> vector<8x384xf32>
    %8 = vector.extract_strided_slice %3 {offsets = [0, 1], sizes = [4, 384], strides = [1, 1]} : vector<4x512xbf16> to vector<4x384xbf16>
    %c1 = arith.constant 1 : index
    %c0_5 = arith.constant 0 : index
    %c0_6 = arith.constant 0 : index
    %9 = vector.load %arg3[%c1, %c0_5, %c0_6] : memref<9x8x4xbf16, #tpu.memory_space<vmem>>, vector<1x8x4xbf16>
    %10 = vector.shape_cast %9 : vector<1x8x4xbf16> to vector<8x4xbf16>
    %cst_7 = arith.constant dense<0.000000e+00> : vector<8x384xf32>
    %11 = tpu.matmul %10, %8, %cst_7 {dimension_numbers = #tpu.dot_dimension_numbers<[1], [0], [0], [1], [0, 0, 1, 1], [], []>} : vector<8x4xbf16>, vector<4x384xbf16>, vector<8x384xf32> -> vector<8x384xf32>
    %12 = arith.addf %7, %11 : vector<8x384xf32>
    %13 = vector.extract_strided_slice %3 {offsets = [0, 2], sizes = [4, 384], strides = [1, 1]} : vector<4x512xbf16> to vector<4x384xbf16>
    %c2 = arith.constant 2 : index
    %c0_8 = arith.constant 0 : index
    %c0_9 = arith.constant 0 : index
    %14 = vector.load %arg3[%c2, %c0_8, %c0_9] : memref<9x8x4xbf16, #tpu.memory_space<vmem>>, vector<1x8x4xbf16>
    %15 = vector.shape_cast %14 : vector<1x8x4xbf16> to vector<8x4xbf16>
    %cst_10 = arith.constant dense<0.000000e+00> : vector<8x384xf32>
    %16 = tpu.matmul %15, %13, %cst_10 {dimension_numbers = #tpu.dot_dimension_numbers<[1], [0], [0], [1], [0, 0, 1, 1], [], []>} : vector<8x4xbf16>, vector<4x384xbf16>, vector<8x384xf32> -> vector<8x384xf32>
    %17 = arith.addf %12, %16 : vector<8x384xf32>
    %18 = vector.extract_strided_slice %3 {offsets = [0, 18], sizes = [4, 384], strides = [1, 1]} : vector<4x512xbf16> to vector<4x384xbf16>
    %c3 = arith.constant 3 : index
    %c0_11 = arith.constant 0 : index
    %c0_12 = arith.constant 0 : index
    %19 = vector.load %arg3[%c3, %c0_11, %c0_12] : memref<9x8x4xbf16, #tpu.memory_space<vmem>>, vector<1x8x4xbf16>
    %20 = vector.shape_cast %19 : vector<1x8x4xbf16> to vector<8x4xbf16>
    %cst_13 = arith.constant dense<0.000000e+00> : vector<8x384xf32>
    %21 = tpu.matmul %20, %18, %cst_13 {dimension_numbers = #tpu.dot_dimension_numbers<[1], [0], [0], [1], [0, 0, 1, 1], [], []>} : vector<8x4xbf16>, vector<4x384xbf16>, vector<8x384xf32> -> vector<8x384xf32>
    %22 = arith.addf %17, %21 : vector<8x384xf32>
    %23 = vector.extract_strided_slice %3 {offsets = [0, 19], sizes = [4, 384], strides = [1, 1]} : vector<4x512xbf16> to vector<4x384xbf16>
    %c4 = arith.constant 4 : index
    %c0_14 = arith.constant 0 : index
    %c0_15 = arith.constant 0 : index
    %24 = vector.load %arg3[%c4, %c0_14, %c0_15] : memref<9x8x4xbf16, #tpu.memory_space<vmem>>, vector<1x8x4xbf16>
    %25 = vector.shape_cast %24 : vector<1x8x4xbf16> to vector<8x4xbf16>
    %cst_16 = arith.constant dense<0.000000e+00> : vector<8x384xf32>
    %26 = tpu.matmul %25, %23, %cst_16 {dimension_numbers = #tpu.dot_dimension_numbers<[1], [0], [0], [1], [0, 0, 1, 1], [], []>} : vector<8x4xbf16>, vector<4x384xbf16>, vector<8x384xf32> -> vector<8x384xf32>
    %27 = arith.addf %22, %26 : vector<8x384xf32>
    %28 = vector.extract_strided_slice %3 {offsets = [0, 20], sizes = [4, 384], strides = [1, 1]} : vector<4x512xbf16> to vector<4x384xbf16>
    %c5 = arith.constant 5 : index
    %c0_17 = arith.constant 0 : index
    %c0_18 = arith.constant 0 : index
    %29 = vector.load %arg3[%c5, %c0_17, %c0_18] : memref<9x8x4xbf16, #tpu.memory_space<vmem>>, vector<1x8x4xbf16>
    %30 = vector.shape_cast %29 : vector<1x8x4xbf16> to vector<8x4xbf16>
    %cst_19 = arith.constant dense<0.000000e+00> : vector<8x384xf32>
    %31 = tpu.matmul %30, %28, %cst_19 {dimension_numbers = #tpu.dot_dimension_numbers<[1], [0], [0], [1], [0, 0, 1, 1], [], []>} : vector<8x4xbf16>, vector<4x384xbf16>, vector<8x384xf32> -> vector<8x384xf32>
    %32 = arith.addf %27, %31 : vector<8x384xf32>
    %33 = vector.extract_strided_slice %3 {offsets = [0, 36], sizes = [4, 384], strides = [1, 1]} : vector<4x512xbf16> to vector<4x384xbf16>
    %c6 = arith.constant 6 : index
    %c0_20 = arith.constant 0 : index
    %c0_21 = arith.constant 0 : index
    %34 = vector.load %arg3[%c6, %c0_20, %c0_21] : memref<9x8x4xbf16, #tpu.memory_space<vmem>>, vector<1x8x4xbf16>
    %35 = vector.shape_cast %34 : vector<1x8x4xbf16> to vector<8x4xbf16>
    %cst_22 = arith.constant dense<0.000000e+00> : vector<8x384xf32>
    %36 = tpu.matmul %35, %33, %cst_22 {dimension_numbers = #tpu.dot_dimension_numbers<[1], [0], [0], [1], [0, 0, 1, 1], [], []>} : vector<8x4xbf16>, vector<4x384xbf16>, vector<8x384xf32> -> vector<8x384xf32>
    %37 = arith.addf %32, %36 : vector<8x384xf32>
    %38 = vector.extract_strided_slice %3 {offsets = [0, 37], sizes = [4, 384], strides = [1, 1]} : vector<4x512xbf16> to vector<4x384xbf16>
    %c7 = arith.constant 7 : index
    %c0_23 = arith.constant 0 : index
    %c0_24 = arith.constant 0 : index
    %39 = vector.load %arg3[%c7, %c0_23, %c0_24] : memref<9x8x4xbf16, #tpu.memory_space<vmem>>, vector<1x8x4xbf16>
    %40 = vector.shape_cast %39 : vector<1x8x4xbf16> to vector<8x4xbf16>
    %cst_25 = arith.constant dense<0.000000e+00> : vector<8x384xf32>
    %41 = tpu.matmul %40, %38, %cst_25 {dimension_numbers = #tpu.dot_dimension_numbers<[1], [0], [0], [1], [0, 0, 1, 1], [], []>} : vector<8x4xbf16>, vector<4x384xbf16>, vector<8x384xf32> -> vector<8x384xf32>
    %42 = arith.addf %37, %41 : vector<8x384xf32>
    %43 = vector.extract_strided_slice %3 {offsets = [0, 38], sizes = [4, 384], strides = [1, 1]} : vector<4x512xbf16> to vector<4x384xbf16>
    %c8 = arith.constant 8 : index
    %c0_26 = arith.constant 0 : index
    %c0_27 = arith.constant 0 : index
    %44 = vector.load %arg3[%c8, %c0_26, %c0_27] : memref<9x8x4xbf16, #tpu.memory_space<vmem>>, vector<1x8x4xbf16>
    %45 = vector.shape_cast %44 : vector<1x8x4xbf16> to vector<8x4xbf16>
    %cst_28 = arith.constant dense<0.000000e+00> : vector<8x384xf32>
    %46 = tpu.matmul %45, %43, %cst_28 {dimension_numbers = #tpu.dot_dimension_numbers<[1], [0], [0], [1], [0, 0, 1, 1], [], []>} : vector<8x4xbf16>, vector<4x384xbf16>, vector<8x384xf32> -> vector<8x384xf32>
    %47 = arith.addf %42, %46 : vector<8x384xf32>
    %c0_29 = arith.constant 0 : index
    %c0_30 = arith.constant 0 : index
    %48 = vector.load %arg4[%c0_29, %c0_30] : memref<8x1xf32, #tpu.memory_space<vmem>>, vector<8x1xf32>
    %49 = vector.broadcast %48 : vector<8x1xf32> to vector<8x384xf32>
    %50 = arith.addf %47, %49 : vector<8x384xf32>
    %c0_31 = arith.constant 0 : index
    %51 = memref.load %arg1[%c0_31] : memref<1xf32, #tpu.memory_space<smem>>
    %52 = vector.broadcast %51 : f32 to vector<8x384xf32>
    %53 = arith.mulf %50, %52 : vector<8x384xf32>
    %c0_32 = arith.constant 0 : index
    %c0_33 = arith.constant 0 : index
    %54 = vector.load %arg5[%c0_32, %c0_33] : memref<8x1xf32, #tpu.memory_space<vmem>>, vector<8x1xf32>
    %55 = vector.broadcast %54 : vector<8x1xf32> to vector<8x384xf32>
    %56 = arith.addf %53, %55 : vector<8x384xf32>
    %c0_34 = arith.constant 0 : index
    %c0_35 = arith.constant 0 : index
    %c0_36 = arith.constant 0 : index
    %57 = vector.load %arg6[%c0_34, %c0_35, %c0_36] : memref<1x8x384xf32, #tpu.memory_space<vmem>>, vector<1x8x384xf32>
    %58 = vector.shape_cast %57 : vector<1x8x384xf32> to vector<8x384xf32>
    %59 = vector.shape_cast %56 : vector<8x384xf32> to vector<1x8x384xf32>
    tpu.vector_store %arg6[%c0_34, %c0_35, %c0_36], %59 {strides = array<i32>} : memref<1x8x384xf32, #tpu.memory_space<vmem>>, vector<1x8x384xf32>,
    return
  }
  func.func @transform_0(%arg0: i32) -> i32 {
    %c0_i32 = arith.constant 0 : i32
    %c0_i32_0 = arith.constant 0 : i32
    return %c0_i32 : i32
  }
  func.func @transform_1(%arg0: i32) -> (i32, i32, i32) {
    %c0_i32 = arith.constant 0 : i32
    %c0_i32_0 = arith.constant 0 : i32
    %c0_i32_1 = arith.constant 0 : i32
    return %arg0, %c0_i32, %c0_i32_0 : i32, i32, i32
  }
  func.func @transform_2(%arg0: i32) -> (i32, i32, i32) {
    %c0_i32 = arith.constant 0 : i32
    %c0_i32_0 = arith.constant 0 : i32
    %c0_i32_1 = arith.constant 0 : i32
    %c0_i32_2 = arith.constant 0 : i32
    return %c0_i32, %c0_i32_0, %c0_i32_1 : i32, i32, i32
  }
  func.func @transform_3(%arg0: i32) -> (i32, i32) {
    %c0_i32 = arith.constant 0 : i32
    %c0_i32_0 = arith.constant 0 : i32
    %c0_i32_1 = arith.constant 0 : i32
    return %c0_i32, %c0_i32_0 : i32, i32
  }
  func.func @transform_4(%arg0: i32) -> (i32, i32) {
    %c0_i32 = arith.constant 0 : i32
    %c0_i32_0 = arith.constant 0 : i32
    %c0_i32_1 = arith.constant 0 : i32
    return %c0_i32, %c0_i32_0 : i32, i32
  }
  func.func @transform_5(%arg0: i32) -> (i32, i32, i32) {
    %c0_i32 = arith.constant 0 : i32
    %c0_i32_0 = arith.constant 0 : i32
    %c0_i32_1 = arith.constant 0 : i32
    return %arg0, %c0_i32, %c0_i32_0 : i32, i32, i32
  }
}

</mosaic_0001>

<bundles_post_ra>
// kernel: tpu_custom_call.1
= control target key start
LH: loop header
LB: loop body
LE: loop exit
PB: predicated region body
PF: predicated region fallthrough
CT: control target
= control target key end

     0   :  { %s1840_s0 = inlined_call_operand.<no memory space> [shape: f32[1], index: 0, kind: input, shape index: {}]   ;;  %s1841_s1 = inlined_call_operand.vmem [shape: s8[2,4,512], index: 1, kind: input, shape index: {}]   ;;  %s1842_s2 = inlined_call_operand.vmem [shape: bf16[9,8,4], index: 2, kind: input, shape index: {}]   ;;  %s1843_s3 = inlined_call_operand.vmem [shape: f32[8,1], index: 3, kind: input, shape index: {}]   ;;  %s1844_s4 = inlined_call_operand.vmem [shape: f32[8,1], index: 4, kind: input, shape index: {}]   ;;  %s1845_s5 = inlined_call_operand.hbm [shape: f32[2,8,384], index: 5, kind: output, shape index: {}]  }
   0x1   :  { %10 = sst [smem:[#allocation2]] %s1840_s0 }
   0x2   :  { %11 = vsyncpa [#allocation4], 0 }
   0x3   :  { %13 = vsyncpa [#allocation4 + $0x1], 0  ;;  %s1598_s20 = smov 0   ;;  %s1600_s21 = smov 0  }
   0x4   :  { %s1602_s22 = smov 0   ;;  %s1604_s23 = smov 0  }
   0x5 LB: > { %s1619_s0 = sadd.s32 4294967295, %s1551_s23   ;;  %s1315_s24 = sadd.s32 4294967294, %s1551_s23   ;;  %s1551_s23 = sphi %s1604_s23, %s1851_s23   ;;  %s1547_s22 = sphi %s1602_s22, %s1850_s22   ;;  %s1543_s21 = sphi %s1600_s21, %s1849_s21   ;;  %s1539_s20 = sphi %s1598_s20, %s1848_s20  }
   0x6   : > { %s1623_s25 = sadd.s32 1, %s1551_s23   ;;  %s136_s26 = sadd.s32 1, %s1547_s22 }
   0x7   : > { %s133_s27 = ssub.s32 %s1551_s23, %s1623_s25  ;;  %p146_p0 = scmp.ne.s32.totalorder %s1547_s22, %s1543_s21 }
   0x8   : > { %p134_p1 = scmp.eq.s32.totalorder %s133_s27, 0  ;;  %p147_p2 = scmp.eq.s32.totalorder %s1619_s0, 1 }
   0x9   : > { %p152_p3 = scmp.ne.s32.totalorder %s1543_s21, %s1539_s20  ;;  %p153_p4 = scmp.eq.s32.totalorder %s1315_s24, 1 }
   0xa   : > { %s1634_s28 = scalar_select %p134_p1, %s1547_s22, %s136_s26  }
   0xb   : > { %p1636_p5 = por %p147_p2, %p146_p0  ;;  %p1640_p6 = por %p153_p4, %p152_p3 }
   0xc   : > { %p1318_p7 = scmp.ge.s32.totalorder %s1551_s23, 1  ;;  %p190_p8 = scmp.lt.s32.totalorder %s1551_s23, 3 }
   0xe   : > { %p191_p9 = pnand %p1318_p7, %p190_p8 }
   0xf   : > { %p217_p10 = scmp.lt.s32.totalorder (!%p191_p9), %s1619_s0, 1  ;;  %v1553_v0 = vmov (!%p191_p9), 0.0   ;;  %v1554_v1 = vmov (!%p191_p9), 0   ;;  %vm1555_vm0 = vmmov (!%p191_p9), 0   ;;  %s1556_s11 = smov (!%p191_p9), 127   ;;  %v1215_v9 = vld [vmem:[%s1843_s3] sm:$0xff] (!%p191_p9) }
  0x10   : > { %194 = sbr.rel (%p191_p9) target bundleno = 455 (0x1c7), region = 40  ;;  %1381 = vmatprep.subr.bf16.mxu1 (!%p191_p9), %v1553_v0  ;;  %303 = vmatprep.mubr.bf16.mxu0 (!%p191_p9), %v1554_v1  ;;  %s1557_s12 = smov (!%p191_p9), 126   ;;  %v1229_v10 = vld [vmem:[%s1844_s4] sm:$0xff] (!%p191_p9)  ;;  %vm253_vm1 = vcmask (!%p191_p9), 1039360   ;;  %vm261_vm2 = vcmask (!%p191_p9), 1041408   ;;  %vm257_vm3 = vcmask (!%p191_p9), 31744  }
  0x11   : > { %1383 = vmatprep.mubr.msk.bf16.mxu1 (!%p191_p9), %vm1555_vm0, %v1553_v0  ;;  %1487 = vset.pattern.permute.xlu0 (!%p191_p9), %v1554_v1  ;;  %s1558_s13 = smov (!%p191_p9), 110   ;;  %s1559_s14 = smov (!%p191_p9), 109   ;;  %v1321_v20 = vld [vmem:[%s1842_s2 + $0x4] sm:$0xf] (!%p191_p9)  ;;  %vm455_vm4 = vcmask (!%p191_p9), 1031168   ;;  %vm565_vm5 = vcmask (!%p191_p9), 900096  }
  0x12   : > { %1488 = vset.pattern.permute.xlu1 (!%p191_p9), %v1554_v1  ;;  %s1560_s15 = smov (!%p191_p9), 108   ;;  %s1561_s16 = smov (!%p191_p9), 92   ;;  %v232_v30 = vld [vmem:[%s1842_s2] sm:$0xf] (!%p191_p9)  ;;  %v1332_v40 = vld [vmem:[%s1842_s2 + $0x8] sm:$0xf] (!%p191_p9) }
  0x13   : > { %s1562_s17 = smov (!%p191_p9), 91   ;;  %s1563_s18 = smov (!%p191_p9), 90   ;;  %vm675_vm6 = vcmask (!%p191_p9), 891904   ;;  %v1336_v50 = vld [vmem:[%s1842_s2 + $0xc] sm:$0xf] (!%p191_p9)  ;;  %vm785_vm7 = vcmask (!%p191_p9), 883712  }
  0x14   : > { %v1340_v60 = vld [vmem:[%s1842_s2 + $0x10] sm:$0xf] (!%p191_p9)  ;;  %vm895_vm8 = vcmask (!%p191_p9), 752640   ;;  %vm1005_vm9 = vcmask (!%p191_p9), 744448   ;;  %vm1115_vm10 = vcmask (!%p191_p9), 736256   ;;  %s214_s8 = sand.u32 (!%p191_p9), 1, %s1543_s21  }
  0x15   : > { %s1435_s9 = smul.u32 (!%p191_p9), 24, %s214_s8 }
  0x17   : > { %s218_s6 = scalar_select %p217_p10, %s1619_s0, 1 }
  0x19   : > { %s1319_s7 = sshll.u32 %s218_s6, 2 }
  0x1a   : > { %s220_s10 = scalar_lea.vmem %s1841_s1, %s1319_s7  ;;  %s1224_s7 = sld [smem:[#allocation2]] }
  0x1b   : > { %v1320_v2 = vld.sshfl [vmem:[%s220_s10] sm:$0x55 pattern:$0x73625140]  ;;  %s1436_s10 = smul.u32 384, %s1619_s0  ;;  %s1242_s0 = scalar_lea.sflag [#allocation4], %s214_s8 }
  0x1c   : > { %v231_v3 = vunpack.c.h.s8.bf16 %v1320_v2  ;;  %v230_v4 = vunpack.c.l.s8.bf16 %v1320_v2 }
  0x1e   : > { %v1657_v5 = vcombine.low %v231_v3, %v231_v3  ;;  %v1659_v6 = vcombine.low %v230_v4, %v230_v4  ;;  %v1325_v7 = vcombine.high %v231_v3, %v231_v3  ;;  %v1323_v8 = vcombine.high %v230_v4, %v230_v4 }
  0x20   : > { %249 = vrot.lane.b32.xlu1 %v1657_v5, %s1556_s11  ;;  %245 = vrot.lane.b32.xlu0 %v1659_v6, %s1556_s11  ;;  %v356_v22 = vsel %vm261_vm2, %v1659_v6, 0  ;;  %v362_v23 = vsel %vm261_vm2, %v1657_v5, 0 }
  0x24   : > { %251 = vrot.lane.b32.xlu1 %v1325_v7, %s1556_s11  ;;  %247 = vrot.lane.b32.xlu0 %v1323_v8, %s1556_s11  ;;  %s216_s11 = scalar_lea.vmem [#allocation3], %s1435_s9 }
  0x28   : > { %447 = vrot.lane.b32.xlu0 %v1659_v6, %s1557_s12  ;;  %449 = vrot.lane.b32.xlu1 %v1323_v8, %s1557_s12 }
  0x2c   : > { %451 = vrot.lane.b32.xlu0 %v1657_v5, %s1557_s12  ;;  %453 = vrot.lane.b32.xlu1 %v1325_v7, %s1557_s12  ;;  %s1256_s12 = sshll.u32 %s216_s11, 4  ;;  %s1798_s12 = int_to_ptr.vmem [resolvable:$true] %s1256_s12 }
  0x30   : > { %557 = vrot.lane.b32.xlu0 %v1659_v6, %s1558_s13  ;;  %559 = vrot.lane.b32.xlu1 %v1323_v8, %s1558_s13 }
  0x34   : > { %561 = vrot.lane.b32.xlu0 %v1657_v5, %s1558_s13  ;;  %563 = vrot.lane.b32.xlu1 %v1325_v7, %s1558_s13 }
  0x38   : > { %667 = vrot.lane.b32.xlu0 %v1659_v6, %s1559_s14  ;;  %669 = vrot.lane.b32.xlu1 %v1323_v8, %s1559_s14 }
  0x3c   : > { %671 = vrot.lane.b32.xlu0 %v1657_v5, %s1559_s14  ;;  %673 = vrot.lane.b32.xlu1 %v1325_v7, %s1559_s14 }
  0x40   : > { %777 = vrot.lane.b32.xlu0 %v1659_v6, %s1560_s15  ;;  %779 = vrot.lane.b32.xlu1 %v1323_v8, %s1560_s15 }
  0x44   : > { %781 = vrot.lane.b32.xlu0 %v1657_v5, %s1560_s15  ;;  %783 = vrot.lane.b32.xlu1 %v1325_v7, %s1560_s15  ;;  %s1796_s15 = scalar_lea.hbm %s1845_s5, %s1436_s10 }
  0x48   : > { %887 = vrot.lane.b32.xlu0 %v1659_v6, %s1561_s16  ;;  %889 = vrot.lane.b32.xlu1 %v1323_v8, %s1561_s16 }
  0x4c   : > { %891 = vrot.lane.b32.xlu0 %v1657_v5, %s1561_s16  ;;  %893 = vrot.lane.b32.xlu1 %v1325_v7, %s1561_s16  ;;  %s1489_s16 = scalar_lea.vmem %s1798_s12, 384 }
  0x4d   : > { %p1490_p11 = scmp.ne.s32.totalorder %s1798_s12, %s1489_s16 }
  0x4f   : > { %p1491_p12 = pnand %p1490_p11, %p1636_p5 }
  0x50   : > { %997 = vrot.lane.b32.xlu0 %v1659_v6, %s1562_s17  ;;  %999 = vrot.lane.b32.xlu1 %v1323_v8, %s1562_s17 }
  0x51   : > { %p1492_p13 = pneg %p1491_p12 }
  0x54   : > { %1001 = vrot.lane.b32.xlu0 %v1657_v5, %s1562_s17  ;;  %1003 = vrot.lane.b32.xlu1 %v1325_v7, %s1562_s17  ;;  %s1564_s17 = smov [#allocation3]  }
  0x58   : > { %1107 = vrot.lane.b32.xlu0 %v1659_v6, %s1563_s18  ;;  %1109 = vrot.lane.b32.xlu1 %v1323_v8, %s1563_s18 }
  0x5c   : > { %1111 = vrot.lane.b32.xlu0 %v1657_v5, %s1563_s18  ;;  %1113 = vrot.lane.b32.xlu1 %v1325_v7, %s1563_s18  ;;  %s1493_s18 = sshll.u32 %s1564_s17, 4  ;;  %s1494_s18 = int_to_ptr.vmem [resolvable:$false] %s1493_s18 }
  0x5d   : > { %s1495_s19 = scalar_lea.vmem %s1494_s18, 768  ;;  %p1496_p0 = scmp.lt.s32.totalorder %s1798_s12, %s1494_s18 }
  0x5e   : > { %p1497_p1 = scmp.lt.s32.totalorder %s1495_s19, %s1489_s16 }
  0x60   : > { %1218 = vperm.xlu0 %1487, %v1215_v9   ;;  %1232 = vperm.xlu1 %1488, %v1229_v10   ;;  %p1498_p2 = por %p1497_p1, %p1496_p0 }
  0x62   : > { %p1499_p3 = pnand %p1498_p2, %p1492_p13 }
  0x92   : > { %v250_v11 = vpop.permute.xlu1 %249  ;;  %v246_v12 = vpop.permute.xlu0 %245 }
  0x96   : > { %v252_v13 = vpop.permute.xlu1 %251  ;;  %v248_v14 = vpop.permute.xlu0 %247 }
  0x97   : > { %v255_v15 = vsel %vm253_vm1, %v248_v14, %v250_v11  ;;  %v254_v16 = vsel %vm253_vm1, %v246_v12, %v248_v14  ;;  %v256_v17 = vsel %vm253_vm1, %v250_v11, %v252_v13 }
  0x98   : > { %1326 = vmatprep.subr.msk.bf16.mxu0 %vm261_vm2, %v255_v15  ;;  %v263_v18 = vsel %vm261_vm2, %v254_v16, 0  ;;  %v269_v19 = vsel %vm261_vm2, %v256_v17, 0 }
  0x99   : > { %272 = vmatpush1.bf16.msra.mxu0 %v263_v18  ;;  %1382 = vmatpush3.bf16.msra.mxu1 %v269_v19  ;;  %v1348_v18 = vld [vmem:[%s1842_s2 + $0x18] sm:$0xf] }
  0x9a   : > { %v448_v21 = vpop.permute.xlu0 %447  ;;  %1329 = vmatprep.subr.msk.bf16.mxu0 %vm261_vm2, %v1323_v8  ;;  %1387 = vmatprep.subr.bf16.mxu1 %v1553_v0  ;;  %v450_v24 = vpop.permute.xlu1 %449  ;;  %v1344_v8 = vld [vmem:[%s1842_s2 + $0x14] sm:$0xf] }
  0x9b   : > { %v456_v27 = vsel %vm455_vm4, %v448_v21, %v450_v24 }
  0x9c   : > { %1327 = vmatmul.mubr.msk.bf16.vlgmr.msra.gmra.mrb[0].mxu0 %vm257_vm3, %v1321_v20  ;;  %1384 = vmatmul.mubr.msk.bf16.vlgmr.msra.gmra.mrb[0].mxu1 %vm257_vm3, %v1321_v20  ;;  %v463_v31 = vsel %vm261_vm2, %v456_v27, 0 }
  0x9d   : > { %365 = vmatpush1.bf16.msra.mxu0 %v356_v22  ;;  %1388 = vmatpush3.bf16.msra.mxu1 %v362_v23 }
  0x9e   : > { %v452_v25 = vpop.permute.xlu0 %451  ;;  %v454_v26 = vpop.permute.xlu1 %453  ;;  %396 = vmatprep.mubr.bf16.mxu0 %v1554_v1  ;;  %1389 = vmatprep.mubr.msk.bf16.mxu1 %vm1555_vm0, %v1553_v0 }
  0x9f   : > { %v457_v28 = vsel %vm455_vm4, %v450_v24, %v452_v25  ;;  %v458_v29 = vsel %vm455_vm4, %v452_v25, %v454_v26  ;;  %1393 = vmatprep.subr.bf16.mxu1 %v1553_v0 }
  0xa0   : > { %1333 = vmatprep.subr.msk.bf16.mxu0 %vm261_vm2, %v457_v28  ;;  %v469_v32 = vsel %vm261_vm2, %v458_v29, 0  ;;  %v1352_v28 = vld [vmem:[%s1842_s2 + $0x1c] sm:$0xf] }
  0xa2   : > { %v558_v33 = vpop.permute.xlu0 %557  ;;  %v560_v34 = vpop.permute.xlu1 %559 }
  0xa3   : > { %v566_v37 = vsel %vm565_vm5, %v558_v33, %v560_v34 }
  0xa4   : > { %1330 = vmatmul.mubr.msk.bf16.vlgmr.msra.gmra.mrb[4].mxu0 %vm257_vm3, %v232_v30  ;;  %1390 = vmatmul.mubr.msk.bf16.vlgmr.msra.gmra.mrb[4].mxu1 %vm257_vm3, %v232_v30  ;;  %v573_v41 = vsel %vm261_vm2, %v566_v37, 0 }
  0xa5   : > { %472 = vmatpush1.bf16.msra.mxu0 %v463_v31  ;;  %1394 = vmatpush3.bf16.msra.mxu1 %v469_v32  ;;  %v1356_v31 = vld [vmem:[%s1842_s2 + $0x20] sm:$0xf] }
  0xa6   : > { %v562_v35 = vpop.permute.xlu0 %561  ;;  %v564_v36 = vpop.permute.xlu1 %563  ;;  %1395 = vmatprep.mubr.msk.bf16.mxu1 %vm1555_vm0, %v1553_v0  ;;  %503 = vmatprep.mubr.bf16.mxu0 %v1554_v1 }
  0xa7   : > { %v567_v38 = vsel %vm565_vm5, %v560_v34, %v562_v35  ;;  %v568_v39 = vsel %vm565_vm5, %v562_v35, %v564_v36  ;;  %1399 = vmatprep.subr.bf16.mxu1 %v1553_v0 }
  0xa8   : > { %1337 = vmatprep.subr.msk.bf16.mxu0 %vm261_vm2, %v567_v38  ;;  %v579_v42 = vsel %vm261_vm2, %v568_v39, 0 }
  0xaa   : > { %v668_v43 = vpop.permute.xlu0 %667  ;;  %v670_v44 = vpop.permute.xlu1 %669 }
  0xab   : > { %v676_v47 = vsel %vm675_vm6, %v668_v43, %v670_v44 }
  0xac   : > { %1334 = vmatmul.mubr.msk.bf16.vlgmr.msra.gmra.mrb[8].mxu0 %vm257_vm3, %v1332_v40  ;;  %1396 = vmatmul.mubr.msk.bf16.vlgmr.msra.gmra.mrb[8].mxu1 %vm257_vm3, %v1332_v40  ;;  %v683_v51 = vsel %vm261_vm2, %v676_v47, 0 }
  0xad   : > { %582 = vmatpush1.bf16.msra.mxu0 %v573_v41  ;;  %1400 = vmatpush3.bf16.msra.mxu1 %v579_v42 }
  0xae   : > { %v672_v45 = vpop.permute.xlu0 %671  ;;  %v674_v46 = vpop.permute.xlu1 %673  ;;  %1401 = vmatprep.mubr.msk.bf16.mxu1 %vm1555_vm0, %v1553_v0  ;;  %613 = vmatprep.mubr.bf16.mxu0 %v1554_v1 }
  0xaf   : > { %v677_v48 = vsel %vm675_vm6, %v670_v44, %v672_v45  ;;  %v678_v49 = vsel %vm675_vm6, %v672_v45, %v674_v46  ;;  %1405 = vmatprep.subr.bf16.mxu1 %v1553_v0 }
  0xb0   : > { %1341 = vmatprep.subr.msk.bf16.mxu0 %vm261_vm2, %v677_v48  ;;  %v689_v52 = vsel %vm261_vm2, %v678_v49, 0 }
  0xb2   : > { %v778_v53 = vpop.permute.xlu0 %777  ;;  %v780_v54 = vpop.permute.xlu1 %779 }
  0xb3   : > { %v786_v57 = vsel %vm785_vm7, %v778_v53, %v780_v54 }
  0xb4   : > { %1338 = vmatmul.mubr.msk.bf16.vlgmr.msra.gmra.mrb[12].mxu0 %vm257_vm3, %v1336_v50  ;;  %1402 = vmatmul.mubr.msk.bf16.vlgmr.msra.gmra.mrb[12].mxu1 %vm257_vm3, %v1336_v50  ;;  %v793_v61 = vsel %vm261_vm2, %v786_v57, 0 }
  0xb5   : > { %692 = vmatpush1.bf16.msra.mxu0 %v683_v51  ;;  %1406 = vmatpush3.bf16.msra.mxu1 %v689_v52 }
  0xb6   : > { %v782_v55 = vpop.permute.xlu0 %781  ;;  %v784_v56 = vpop.permute.xlu1 %783  ;;  %1407 = vmatprep.mubr.msk.bf16.mxu1 %vm1555_vm0, %v1553_v0  ;;  %723 = vmatprep.mubr.bf16.mxu0 %v1554_v1 }
  0xb7   : > { %v787_v58 = vsel %vm785_vm7, %v780_v54, %v782_v55  ;;  %v788_v59 = vsel %vm785_vm7, %v782_v55, %v784_v56  ;;  %1411 = vmatprep.subr.bf16.mxu1 %v1553_v0 }
  0xb8   : > { %1345 = vmatprep.subr.msk.bf16.mxu0 %vm261_vm2, %v787_v58  ;;  %v799_v62 = vsel %vm261_vm2, %v788_v59, 0 }
  0xba   : > { %v888_v63 = vpop.permute.xlu0 %887  ;;  %v890_v2 = vpop.permute.xlu1 %889 }
  0xbb   : > { %v896_v5 = vsel %vm895_vm8, %v888_v63, %v890_v2 }
  0xbc   : > { %1342 = vmatmul.mubr.msk.bf16.vlgmr.msra.gmra.mrb[16].mxu0 %vm257_vm3, %v1340_v60  ;;  %1408 = vmatmul.mubr.msk.bf16.vlgmr.msra.gmra.mrb[16].mxu1 %vm257_vm3, %v1340_v60  ;;  %v903_v9 = vsel %vm261_vm2, %v896_v5, 0 }
  0xbd   : > { %802 = vmatpush1.bf16.msra.mxu0 %v793_v61  ;;  %1412 = vmatpush3.bf16.msra.mxu1 %v799_v62 }
  0xbe   : > { %v892_v3 = vpop.permute.xlu0 %891  ;;  %v894_v4 = vpop.permute.xlu1 %893  ;;  %1413 = vmatprep.mubr.msk.bf16.mxu1 %vm1555_vm0, %v1553_v0  ;;  %833 = vmatprep.mubr.bf16.mxu0 %v1554_v1 }
  0xbf   : > { %v897_v6 = vsel %vm895_vm8, %v890_v2, %v892_v3  ;;  %v898_v7 = vsel %vm895_vm8, %v892_v3, %v894_v4  ;;  %1417 = vmatprep.subr.bf16.mxu1 %v1553_v0 }
  0xc0   : > { %1349 = vmatprep.subr.msk.bf16.mxu0 %vm261_vm2, %v897_v6  ;;  %v909_v10 = vsel %vm261_vm2, %v898_v7, 0 }
  0xc2   : > { %v998_v11 = vpop.permute.xlu0 %997  ;;  %v1000_v12 = vpop.permute.xlu1 %999 }
  0xc3   : > { %v1006_v15 = vsel %vm1005_vm9, %v998_v11, %v1000_v12 }
  0xc4   : > { %1346 = vmatmul.mubr.msk.bf16.vlgmr.msra.gmra.mrb[20].mxu0 %vm257_vm3, %v1344_v8  ;;  %1414 = vmatmul.mubr.msk.bf16.vlgmr.msra.gmra.mrb[20].mxu1 %vm257_vm3, %v1344_v8  ;;  %v1013_v19 = vsel %vm261_vm2, %v1006_v15, 0 }
  0xc5   : > { %912 = vmatpush1.bf16.msra.mxu0 %v903_v9  ;;  %1418 = vmatpush3.bf16.msra.mxu1 %v909_v10 }
  0xc6   : > { %v1002_v13 = vpop.permute.xlu0 %1001  ;;  %v1004_v14 = vpop.permute.xlu1 %1003  ;;  %1419 = vmatprep.mubr.msk.bf16.mxu1 %vm1555_vm0, %v1553_v0  ;;  %943 = vmatprep.mubr.bf16.mxu0 %v1554_v1 }
  0xc7   : > { %v1007_v16 = vsel %vm1005_vm9, %v1000_v12, %v1002_v13  ;;  %v1008_v17 = vsel %vm1005_vm9, %v1002_v13, %v1004_v14  ;;  %1423 = vmatprep.subr.bf16.mxu1 %v1553_v0 }
  0xc8   : > { %1353 = vmatprep.subr.msk.bf16.mxu0 %vm261_vm2, %v1007_v16  ;;  %v1019_v20 = vsel %vm261_vm2, %v1008_v17, 0 }
  0xca   : > { %v1108_v21 = vpop.permute.xlu0 %1107  ;;  %v1110_v22 = vpop.permute.xlu1 %1109 }
  0xcb   : > { %v1116_v25 = vsel %vm1115_vm10, %v1108_v21, %v1110_v22 }
  0xcc   : > { %1350 = vmatmul.mubr.msk.bf16.vlgmr.msra.gmra.mrb[24].mxu0 %vm257_vm3, %v1348_v18  ;;  %1420 = vmatmul.mubr.msk.bf16.vlgmr.msra.gmra.mrb[24].mxu1 %vm257_vm3, %v1348_v18  ;;  %v1123_v29 = vsel %vm261_vm2, %v1116_v25, 0 }
  0xcd   : > { %1022 = vmatpush1.bf16.msra.mxu0 %v1013_v19  ;;  %1424 = vmatpush3.bf16.msra.mxu1 %v1019_v20 }
  0xce   : > { %v1112_v23 = vpop.permute.xlu0 %1111  ;;  %v1114_v24 = vpop.permute.xlu1 %1113  ;;  %1053 = vmatprep.mubr.bf16.mxu0 %v1554_v1  ;;  %1425 = vmatprep.mubr.msk.bf16.mxu1 %vm1555_vm0, %v1553_v0 }
  0xcf   : > { %v1117_v26 = vsel %vm1115_vm10, %v1110_v22, %v1112_v23  ;;  %v1118_v27 = vsel %vm1115_vm10, %v1112_v23, %v1114_v24  ;;  %1429 = vmatprep.subr.bf16.mxu1 %v1553_v0 }
  0xd0   : > { %1357 = vmatprep.subr.msk.bf16.mxu0 %vm261_vm2, %v1117_v26  ;;  %v1129_v30 = vsel %vm261_vm2, %v1118_v27, 0 }
  0xd4   : > { %1354 = vmatmul.mubr.msk.bf16.vlgmr.msra.gmra.mrb[28].mxu0 %vm257_vm3, %v1352_v28  ;;  %1426 = vmatmul.mubr.msk.bf16.vlgmr.msra.gmra.mrb[28].mxu1 %vm257_vm3, %v1352_v28 }
  0xd5   : > { %1132 = vmatpush1.bf16.msra.mxu0 %v1123_v29  ;;  %1430 = vmatpush3.bf16.msra.mxu1 %v1129_v30 }
  0xd6   : > { %1163 = vmatprep.mubr.bf16.mxu0 %v1554_v1  ;;  %1431 = vmatprep.mubr.msk.bf16.mxu1 %vm1555_vm0, %v1553_v0 }
  0xdc   : > { %1358 = vmatmul.mubr.msk.bf16.vlgmr.msra.gmra.mrb[32].mxu0 %vm257_vm3, %v1356_v31  ;;  %1432 = vmatmul.mubr.msk.bf16.vlgmr.msra.gmra.mrb[32].mxu1 %vm257_vm3, %v1356_v31 }
 0x16f   : > { %v305_v32 = vpop.f32.mrb[0].mxu0  ;;  %v346_v33 = vpop.f32.mrb[0].mxu1 }
 0x170   : > { %v307_v34 = vpop.f32.mrb[1].mxu0  ;;  %v1385_v35 = vpop.f32.mrb[1].mxu1 }
 0x171   : > { %v309_v36 = vpop.f32.mrb[2].mxu0  ;;  %v349_v37 = vpop.f32.mrb[2].mxu1 }
 0x172   : > { %v310_v38 = vpop.f32.mrb[3].mxu0  ;;  %v1386_v39 = vpop.f32.mrb[3].mxu1 }
 0x177   : > { %v398_v1 = vpop.f32.mrb[4].mxu0  ;;  %v439_v40 = vpop.f32.mrb[4].mxu1 }
 0x178   : > { %v399_v41 = vadd.f32 %v398_v1, %v305_v32  ;;  %v440_v0 = vadd.f32 %v439_v40, %v346_v33  ;;  %v400_v42 = vpop.f32.mrb[5].mxu0  ;;  %v1391_v43 = vpop.f32.mrb[5].mxu1 }
 0x179   : > { %v401_v44 = vadd.f32 %v400_v42, %v307_v34  ;;  %v402_v45 = vpop.f32.mrb[6].mxu0  ;;  %v442_v46 = vpop.f32.mrb[6].mxu1 }
 0x17a   : > { %v403_v47 = vpop.f32.mrb[7].mxu0  ;;  %v1392_v48 = vpop.f32.mrb[7].mxu1 }
 0x17f   : > { %v505_v49 = vpop.f32.mrb[8].mxu0  ;;  %v546_v50 = vpop.f32.mrb[8].mxu1 }
 0x180   : > { %v552_v51 = vadd.f32 %v505_v49, %v399_v41  ;;  %v554_v52 = vadd.f32 %v546_v50, %v440_v0  ;;  %v507_v53 = vpop.f32.mrb[9].mxu0  ;;  %v1397_v54 = vpop.f32.mrb[9].mxu1 }
 0x181   : > { %v553_v55 = vadd.f32 %v507_v53, %v401_v44  ;;  %v509_v56 = vpop.f32.mrb[10].mxu0  ;;  %v549_v57 = vpop.f32.mrb[10].mxu1 }
 0x182   : > { %v510_v58 = vpop.f32.mrb[11].mxu0  ;;  %v1398_v59 = vpop.f32.mrb[11].mxu1 }
 0x187   : > { %v615_v60 = vpop.f32.mrb[12].mxu0  ;;  %v656_v61 = vpop.f32.mrb[12].mxu1 }
 0x188   : > { %v662_v62 = vadd.f32 %v615_v60, %v552_v51  ;;  %v664_v63 = vadd.f32 %v656_v61, %v554_v52  ;;  %v617_v2 = vpop.f32.mrb[13].mxu0  ;;  %v1403_v3 = vpop.f32.mrb[13].mxu1  ;;  %v1225_v61 = vstv %s1224_s7 }
 0x189   : > { %v663_v4 = vadd.f32 %v617_v2, %v553_v55  ;;  %v619_v5 = vpop.f32.mrb[14].mxu0  ;;  %v659_v6 = vpop.f32.mrb[14].mxu1 }
 0x18a   : > { %v620_v7 = vpop.f32.mrb[15].mxu0  ;;  %v1404_v8 = vpop.f32.mrb[15].mxu1 }
 0x18b   : > { %v1219_v51 = vpop.permute.xlu0 %1218  ;;  %v1233_v5 = vpop.permute.xlu1 %1232 }
 0x18f   : > { %v725_v9 = vpop.f32.mrb[16].mxu0  ;;  %v766_v10 = vpop.f32.mrb[16].mxu1 }
 0x190   : > { %v772_v11 = vadd.f32 %v725_v9, %v662_v62  ;;  %v774_v12 = vadd.f32 %v766_v10, %v664_v63  ;;  %v727_v13 = vpop.f32.mrb[17].mxu0  ;;  %v1409_v14 = vpop.f32.mrb[17].mxu1 }
 0x191   : > { %v773_v15 = vadd.f32 %v727_v13, %v663_v4  ;;  %v729_v16 = vpop.f32.mrb[18].mxu0  ;;  %v769_v17 = vpop.f32.mrb[18].mxu1 }
 0x192   : > { %v730_v18 = vpop.f32.mrb[19].mxu0  ;;  %v1410_v19 = vpop.f32.mrb[19].mxu1 }
 0x197   : > { %v835_v20 = vpop.f32.mrb[20].mxu0  ;;  %v876_v21 = vpop.f32.mrb[20].mxu1 }
 0x198   : > { %v882_v22 = vadd.f32 %v835_v20, %v772_v11  ;;  %v884_v23 = vadd.f32 %v876_v21, %v774_v12  ;;  %v837_v24 = vpop.f32.mrb[21].mxu0  ;;  %v1415_v25 = vpop.f32.mrb[21].mxu1 }
 0x199   : > { %v883_v26 = vadd.f32 %v837_v24, %v773_v15  ;;  %v839_v27 = vpop.f32.mrb[22].mxu0  ;;  %v879_v28 = vpop.f32.mrb[22].mxu1 }
 0x19a   : > { %v840_v29 = vpop.f32.mrb[23].mxu0  ;;  %v1416_v30 = vpop.f32.mrb[23].mxu1 }
 0x19f   : > { %v945_v31 = vpop.f32.mrb[24].mxu0  ;;  %v986_v32 = vpop.f32.mrb[24].mxu1 }
 0x1a0   : > { %v992_v33 = vadd.f32 %v945_v31, %v882_v22  ;;  %v994_v34 = vadd.f32 %v986_v32, %v884_v23  ;;  %v947_v35 = vpop.f32.mrb[25].mxu0  ;;  %v1421_v36 = vpop.f32.mrb[25].mxu1 }
 0x1a1   : > { %v993_v37 = vadd.f32 %v947_v35, %v883_v26  ;;  %v949_v38 = vpop.f32.mrb[26].mxu0  ;;  %v989_v39 = vpop.f32.mrb[26].mxu1 }
 0x1a2   : > { %v950_v1 = vpop.f32.mrb[27].mxu0  ;;  %v1422_v40 = vpop.f32.mrb[27].mxu1 }
 0x1a7   : > { %v1055_v41 = vpop.f32.mrb[28].mxu0  ;;  %v1096_v0 = vpop.f32.mrb[28].mxu1 }
 0x1a8   : > { %v1102_v42 = vadd.f32 %v1055_v41, %v992_v33  ;;  %v1104_v43 = vadd.f32 %v1096_v0, %v994_v34  ;;  %v1057_v44 = vpop.f32.mrb[29].mxu0  ;;  %v1427_v45 = vpop.f32.mrb[29].mxu1 }
 0x1a9   : > { %v1103_v46 = vadd.f32 %v1057_v44, %v993_v37  ;;  %v1059_v47 = vpop.f32.mrb[30].mxu0  ;;  %v1099_v48 = vpop.f32.mrb[30].mxu1 }
 0x1aa   : > { %v1060_v49 = vpop.f32.mrb[31].mxu0  ;;  %v1428_v50 = vpop.f32.mrb[31].mxu1 }
 0x1af   : > { %v1165_v52 = vpop.f32.mrb[32].mxu0  ;;  %v1206_v53 = vpop.f32.mrb[32].mxu1 }
 0x1b0   : > { %v1212_v54 = vadd.f32 %v1165_v52, %v1102_v42  ;;  %v1214_v55 = vadd.f32 %v1206_v53, %v1104_v43  ;;  %v1167_v56 = vpop.f32.mrb[33].mxu0  ;;  %v1433_v57 = vpop.f32.mrb[33].mxu1 }
 0x1b1   : > { %v1213_v58 = vadd.f32 %v1167_v56, %v1103_v46  ;;  %v1209_v59 = vpop.f32.mrb[34].mxu1  ;;  %v1169_v60 = vpop.f32.mrb[34].mxu0 }
 0x1b2   : > { %v1221_v62 = vadd.f32 %v1219_v51, %v1212_v54  ;;  %v1223_v63 = vadd.f32 %v1219_v51, %v1214_v55  ;;  %v1170_v2 = vpop.f32.mrb[35].mxu0  ;;  %v1434_v3 = vpop.f32.mrb[35].mxu1 }
 0x1b3   : > { %v1222_v4 = vadd.f32 %v1219_v51, %v1213_v58 }
 0x1b4   : > { %v1226_v6 = vmul.f32 %v1225_v61, %v1221_v62  ;;  %v1228_v7 = vmul.f32 %v1225_v61, %v1223_v63 }
 0x1b5   : > { %v1227_v8 = vmul.f32 %v1225_v61, %v1222_v4 }
 0x1b6   : > { %v1235_v9 = vadd.f32 %v1233_v5, %v1226_v6  ;;  %v1237_v10 = vadd.f32 %v1233_v5, %v1228_v7 }
 0x1b7   : > { %v1236_v11 = vadd.f32 %v1233_v5, %v1227_v8 }
 0x1b8   : > { %1238 = vst [vmem:[%s216_s11] sm:$0xff] %v1235_v9  ;;  %1240 = vst [vmem:[%s216_s11 + $0x10] sm:$0xff] %v1237_v10 }
 0x1b9   : > { %1239 = vst [vmem:[%s216_s11 + $0x8] sm:$0xff] %v1236_v11 }
 0x1ba   : > { %1502 = shalt.err (!%p1499_p3)
}
 0x1bb   : > { %s1503_s24 = scalar_lea.hbm %s1796_s15, 384  ;;  %s1507_s6 = scalar_lea.hbm %s1845_s5, 768 }
 0x1bc   : > { %p1504_p4 = scmp.ne.s32.totalorder %s1796_s15, %s1503_s24  ;;  %p1508_p9 = scmp.lt.u32.totalorder %s1796_s15, %s1845_s5 }
 0x1bd   : > { %p1509_p10 = scmp.lt.u32.totalorder %s1507_s6, %s1503_s24  ;;  %p1511_p12 = scmp.lt.u32.totalorder %s1503_s24, %s1796_s15 }
 0x1be   : > { %p1505_p7 = pnand %p1504_p4, %p1636_p5 }
 0x1bf   : > { %p1510_p11 = por %p1509_p10, %p1508_p9 }
 0x1c0   : > { %p1506_p8 = pneg %p1505_p7 }
 0x1c1   : > { %p1512_p13 = por %p1511_p12, %p1510_p11 }
 0x1c3   : > { %p1513_p0 = pnand %p1512_p13, %p1506_p8 }
 0x1c5   : > { %1516 = shalt.err (!%p1513_p0)
}
 0x1c6   : > { %1437 = dma.vmem_to_hbm [thread:$0]  (%p1636_p5), %s1798_s12, 384, %s1796_s15, %s1242_s0  }
 0x1c7 PF: > { %p1443_p1 = scmp.ge.s32.totalorder %s1551_s23, 2  ;;  %s1268_s9 = sand.u32 1, %s1539_s20  }
 0x1c8   : > { %s1269_s10 = scalar_lea.sflag [#allocation4], %s1268_s9 }
 0x1c9   : > { %p1440_p2 = pnand %p1443_p1, %p1640_p6 }
 0x1cb   : > { %1534 = dma.done.wait (!%p1440_p2), %s1269_s10, 384  }
 0x1cc   : > { %1536 = vsyncadd (!%p1440_p2), %s1269_s10, 4294966912  ;;  %p16_p3 = scmp.ge.s32.totalorder %s1623_s25, 4   ;;  %s1848_s20 = smov %s1543_s21 }
 0x1cd   : > { %s1849_s21 = smov %s1547_s22  ;;  %s1850_s22 = smov %s1634_s28 }
 0x1ce   : > { %s1851_s23 = smov %s1623_s25  ;;  %18 = sbr.rel (!%p16_p3) target bundleno = 5 (0x5), region = 83 }
 0x1d5   :  { %1274 = vsyncpa [#allocation4], 1 }
 0x1d6   :  { %1276 = vsyncpa [#allocation4 + $0x1], 1 }

</bundles_post_ra>
